<compile_context>
chip_gen: v6e
topology: v6e:2x2x1
jax: 0.10.0
libtpu: 0.0.40
codegen_flags: <defaults>
</compile_context>

<pallas_src>
import functools

import jax
import jax.numpy as jnp
import numpy as np
from jax.experimental import pallas as pl
from jax.experimental.pallas import tpu as pltpu


_LANE = 128
_MAX_TILE_LANES = 32768                 # ~13 * 32768 * 4B ≈ 1.6 MiB f32 pred block
_VMEM_LIMIT_BYTES = 48 * 1024 * 1024    # fits v7x's 64 MiB/TC with headroom


def _make_dice_kernel(num_classes, p, ignore_index, hw_valid, tile_hw,
                      has_tail):
    """Static config closed over; kernel traced once."""

    def kernel(pred_ref, targ_ref, inter_ref, den_ref):
        h = pl.program_id(1)

        @pl.when(h == 0)
        def _init():
            inter_ref[...] = jnp.zeros_like(inter_ref)
            den_ref[...] = jnp.zeros_like(den_ref)

        pred = pred_ref[0].astype(jnp.float32)   # [C, THW] logits (cast post-DMA)
        targ = targ_ref[0]                       # [1, THW] int32 class ids

        # Ragged tail of a partial last block holds unspecified data: zero the
        # logits BEFORE exp and fold the lane mask into the validity mask.
        in_range = None
        if has_tail:
            lane = jax.lax.broadcasted_iota(jnp.int32, (1, tile_hw), 1)
            in_range = (h * tile_hw + lane) < hw_valid
            pred = jnp.where(in_range, pred, 0.0)

        valid = None
        if ignore_index is not None:
            valid = targ != ignore_index
        if in_range is not None:
            valid = in_range if valid is None else (valid & in_range)

        # channel softmax (axis 0); reciprocal + mask fused into one scale vec.
        # (exact reciprocal kept so the 1e-5 f32 reference tolerance holds;
        #  approx=True would route it to the EUP but perturbs low bits.)
        m = jnp.max(pred, axis=0, keepdims=True)
        e = jnp.exp(pred - m)
        inv = pl.reciprocal(jnp.sum(e, axis=0, keepdims=True))
        scale = inv if valid is None else inv * valid.astype(jnp.float32)
        sm = e * scale                           # masked softmax, [C, THW]

        # one-hot target with the mask folded into the select (values in {0,1})
        class_ids = jax.lax.broadcasted_iota(jnp.int32, (num_classes, 1), 0)
        hit = class_ids == targ                  # broadcast -> [C, THW]
        if valid is not None:
            hit = hit & valid
        onehot = hit.astype(jnp.float32)         # masked; onehot**p == onehot

        inter = sm * onehot

        # predict ** p (integer p via repeated multiply); sm already masked,
        # so no extra mask multiply is needed.
        if isinstance(p, int) and p >= 1:
            p_pow = sm
            for _ in range(p - 1):
                p_pow = p_pow * sm
        else:
            p_pow = sm ** p

        inter_ref[0] += jnp.sum(inter, axis=1, keepdims=True)           # [C, 1]
        den_ref[0] += jnp.sum(p_pow + onehot, axis=1, keepdims=True)    # [C, 1]

    return kernel


@functools.partial(jax.jit,
                   static_argnames=("num_classes", "smooth", "p",
                                    "ignore_index"))
def dice_loss_pallas(predict, target, *, num_classes=13, smooth=1.0, p=2,
                     ignore_index=None):
    """predict: [N, C, H, W] logits; target: [N, H, W] integer class ids."""
    N, C = predict.shape[0], predict.shape[1]
    assert C == num_classes, "channel dim must equal num_classes"
    HW = int(np.prod(predict.shape[2:]))

    # lane-aligned spatial tiles, no HBM padding copy: the last block may be
    # partial and is masked inside the kernel.
    tile_hw = min(_MAX_TILE_LANES, -(-HW // _LANE) * _LANE)
    n_tiles = pl.cdiv(HW, tile_hw)
    has_tail = n_tiles * tile_hw != HW

    pred_flat = predict.reshape(N, C, HW)        # keep input dtype (no up-cast)
    targ_flat = target.reshape(N, 1, HW).astype(jnp.int32)

    kernel = _make_dice_kernel(num_classes, p, ignore_index, HW, tile_hw,
                               has_tail)

    part_shape = jax.ShapeDtypeStruct((N, C, 1), jnp.float32)
    part_spec = pl.BlockSpec((1, C, 1), lambda n, h: (n, 0, 0))

    # TODO(synk): on v7x with N == 1 the batch-parallel axis leaves one
    # TensorCore idle; a 2-way "parallel" split of the spatial tiles (outputs
    # shaped (N, 2, C, 1), summed below) would recover it.
    inter, den = pl.pallas_call(
        kernel,
        out_shape=(part_shape, part_shape),
        grid_spec=pltpu.PrefetchScalarGridSpec(
            num_scalar_prefetch=0,
            grid=(N, n_tiles),
            in_specs=[
                pl.BlockSpec((1, C, tile_hw), lambda n, h: (n, 0, h)),
                pl.BlockSpec((1, 1, tile_hw), lambda n, h: (n, 0, h)),
            ],
            out_specs=[part_spec, part_spec],
        ),
        compiler_params=pltpu.CompilerParams(
            dimension_semantics=("parallel", "arbitrary"),
            vmem_limit_bytes=_VMEM_LIMIT_BYTES),
    )(pred_flat, targ_flat)

    # tiny final combine in plain JAX
    inter = jnp.sum(inter[..., 0], axis=0)       # [C]
    den = jnp.sum(den[..., 0], axis=0)           # [C]  (= sum pred^p + sum targ^p)
    per_class = 1.0 - (2.0 * inter + smooth) / (den + smooth)
    if ignore_index is not None:
        cid = jnp.arange(num_classes)
        per_class = jnp.where(cid == ignore_index, 0.0, per_class)
    # TODO(synk): per-class `weight` rescaling not implemented (the original
    # module's weight path references a nonexistent attribute; weight=None only).
    return jnp.sum(per_class) / num_classes


def dice_loss_ref(predict, target, *, num_classes=13, smooth=1.0, p=2,
                  ignore_index=None):
    """Pure-JAX reference mirroring the PyTorch DiceLoss forward."""
    N, C = predict.shape[0], predict.shape[1]
    if ignore_index is not None:
        mask = target != ignore_index
    else:
        mask = jnp.ones_like(target, dtype=bool)
    t = target * mask
    onehot = jax.nn.one_hot(t, num_classes, axis=1, dtype=jnp.float32)
    onehot = onehot * mask[:, None].astype(jnp.float32)
    pred = jax.nn.softmax(predict.astype(jnp.float32), axis=1)
    pred = pred * mask[:, None].astype(jnp.float32)

    total = jnp.float32(0.0)
    for i in range(C):
        if ignore_index is not None and i == ignore_index:
            continue
        pf = pred[:, i].reshape(N, -1)
        tf = onehot[:, i].reshape(N, -1)
        num = jnp.sum(pf * tf) * 2.0 + smooth
        den = jnp.sum(pf ** p + tf ** p) + smooth
        total = total + (1.0 - num / den)
    return total / C


if __name__ == "__main__":
    key = jax.random.PRNGKey(0)
    k1, k2 = jax.random.split(key)

    # small shapes consistent with the module: N=2, C=num_classes=13, 16x16
    N, C, H, W = 2, 13, 16, 16
    predict = jax.random.normal(k1, (N, C, H, W), dtype=jnp.float32)
    target = jax.random.randint(k2, (N, H, W), 0, C, dtype=jnp.int32)

    loss = jax.block_until_ready(
        dice_loss_pallas(predict, target, num_classes=C))
    ref = jax.block_until_ready(dice_loss_ref(predict, target, num_classes=C))
    np.testing.assert_allclose(np.asarray(loss), np.asarray(ref),
                               rtol=1e-5, atol=1e-5)

    # second case: ragged spatial size (exercises the partial-block tail mask)
    # plus ignore_index
    H2, W2 = 9, 10
    k3, k4 = jax.random.split(k1)
    predict2 = jax.random.normal(k3, (N, C, H2, W2), dtype=jnp.float32)
    target2 = jax.random.randint(k4, (N, H2, W2), 0, C, dtype=jnp.int32)
    loss2 = jax.block_until_ready(
        dice_loss_pallas(predict2, target2, num_classes=C, ignore_index=3))
    ref2 = jax.block_until_ready(
        dice_loss_ref(predict2, target2, num_classes=C, ignore_index=3))
    np.testing.assert_allclose(np.asarray(loss2), np.asarray(ref2),
                               rtol=1e-5, atol=1e-5)

    print("KERNEL_OK")
</pallas_src>

<mosaic_0001>
module attributes {stable_mosaic.version = 11 : i64} {
  func.func @kernel(%arg0: i32, %arg1: i32, %arg2: memref<1x13x256xf32, #tpu.memory_space<vmem>>, %arg3: memref<1x1x256xi32, #tpu.memory_space<vmem>>, %arg4: memref<1x13x1xf32, #tpu.memory_space<vmem>>, %arg5: memref<1x13x1xf32, #tpu.memory_space<vmem>>) attributes {dimension_semantics = [#tpu.dimension_semantics<parallel>, #tpu.dimension_semantics<arbitrary>], iteration_bounds = array<i64: 2, 1>, scalar_prefetch = 0 : i64, scratch_operands = 0 : i64, tpu.core_type = #tpu.core_type<tc>, window_params = [{transform_indices = @transform_0, window_bounds = array<i64: 1, 13, 256>}, {transform_indices = @transform_1, window_bounds = array<i64: 1, 1, 256>}, {transform_indices = @transform_2, window_bounds = array<i64: 1, 13, 1>}, {transform_indices = @transform_3, window_bounds = array<i64: 1, 13, 1>}]} {
    %c0_i32 = arith.constant 0 : i32
    %0 = arith.cmpi eq, %arg1, %c0_i32 : i32
    %1 = arith.extui %0 : i1 to i32
    %c0_i32_0 = arith.constant 0 : i32
    %2 = arith.cmpi ne, %1, %c0_i32_0 : i32
    scf.if %2 {
      %cst_21 = arith.constant 0.000000e+00 : f32
      %42 = vector.broadcast %cst_21 : f32 to vector<1x13x1xf32>
      %c0_22 = arith.constant 0 : index
      %c0_23 = arith.constant 0 : index
      %c0_24 = arith.constant 0 : index
      %43 = vector.load %arg4[%c0_22, %c0_23, %c0_24] : memref<1x13x1xf32, #tpu.memory_space<vmem>>, vector<1x13x1xf32>
      tpu.vector_store %arg4[%c0_22, %c0_23, %c0_24], %42 {strides = array<i32>} : memref<1x13x1xf32, #tpu.memory_space<vmem>>, vector<1x13x1xf32>,
      %cst_25 = arith.constant 0.000000e+00 : f32
      %44 = vector.broadcast %cst_25 : f32 to vector<1x13x1xf32>
      %c0_26 = arith.constant 0 : index
      %c0_27 = arith.constant 0 : index
      %c0_28 = arith.constant 0 : index
      %45 = vector.load %arg5[%c0_26, %c0_27, %c0_28] : memref<1x13x1xf32, #tpu.memory_space<vmem>>, vector<1x13x1xf32>
      tpu.vector_store %arg5[%c0_26, %c0_27, %c0_28], %44 {strides = array<i32>} : memref<1x13x1xf32, #tpu.memory_space<vmem>>, vector<1x13x1xf32>,
    } else {
    }
    %c0 = arith.constant 0 : index
    %c0_1 = arith.constant 0 : index
    %c0_2 = arith.constant 0 : index
    %3 = vector.load %arg2[%c0, %c0_1, %c0_2] : memref<1x13x256xf32, #tpu.memory_space<vmem>>, vector<1x13x256xf32>
    %4 = vector.shape_cast %3 : vector<1x13x256xf32> to vector<13x256xf32>
    %c0_3 = arith.constant 0 : index
    %c0_4 = arith.constant 0 : index
    %c0_5 = arith.constant 0 : index
    %5 = vector.load %arg3[%c0_3, %c0_4, %c0_5] : memref<1x1x256xi32, #tpu.memory_space<vmem>>, vector<1x1x256xi32>
    %6 = vector.shape_cast %5 : vector<1x1x256xi32> to vector<1x256xi32>
    %cst = arith.constant dense<0xFF800000> : vector<256xf32>
    %7 = vector.multi_reduction <maximumf>, %4, %cst [0] : vector<13x256xf32> to vector<256xf32>
    %8 = vector.shape_cast %7 : vector<256xf32> to vector<1x256xf32>
    %9 = vector.broadcast %8 : vector<1x256xf32> to vector<13x256xf32>
    %10 = arith.subf %4, %9 : vector<13x256xf32>
    %11 = math.exp %10 : vector<13x256xf32>
    %cst_6 = arith.constant dense<0.000000e+00> : vector<256xf32>
    %12 = vector.multi_reduction <add>, %11, %cst_6 [0] : vector<13x256xf32> to vector<256xf32>
    %13 = vector.shape_cast %12 : vector<256xf32> to vector<1x256xf32>
    %14 = tpu.reciprocal %13 : vector<1x256xf32> -> vector<1x256xf32>
    %15 = vector.broadcast %14 : vector<1x256xf32> to vector<13x256xf32>
    %16 = arith.mulf %11, %15 : vector<13x256xf32>
    %17 = tpu.iota {dimensions = array<i32: 0>} : vector<13x1xi32>
    %18 = vector.broadcast %17 : vector<13x1xi32> to vector<13x256xi32>
    %19 = vector.broadcast %6 : vector<1x256xi32> to vector<13x256xi32>
    %20 = arith.cmpi eq, %18, %19 : vector<13x256xi32>
    %21 = arith.extui %20 : vector<13x256xi1> to vector<13x256xi32>
    %22 = arith.sitofp %21 : vector<13x256xi32> to vector<13x256xf32>
    %23 = arith.mulf %16, %22 : vector<13x256xf32>
    %24 = arith.mulf %16, %16 : vector<13x256xf32>
    %c0_7 = arith.constant 0 : index
    %c0_8 = arith.constant 0 : index
    %c0_9 = arith.constant 0 : index
    %25 = vector.load %arg4[%c0_7, %c0_8, %c0_9] : memref<1x13x1xf32, #tpu.memory_space<vmem>>, vector<1x13x1xf32>
    %26 = vector.shape_cast %25 : vector<1x13x1xf32> to vector<13x1xf32>
    %cst_10 = arith.constant dense<0.000000e+00> : vector<13xf32>
    %27 = vector.multi_reduction <add>, %23, %cst_10 [1] : vector<13x256xf32> to vector<13xf32>
    %28 = vector.shape_cast %27 : vector<13xf32> to vector<13x1xf32>
    %29 = arith.addf %26, %28 : vector<13x1xf32>
    %c0_11 = arith.constant 0 : index
    %c0_12 = arith.constant 0 : index
    %c0_13 = arith.constant 0 : index
    %30 = vector.load %arg4[%c0_11, %c0_12, %c0_13] : memref<1x13x1xf32, #tpu.memory_space<vmem>>, vector<1x13x1xf32>
    %31 = vector.shape_cast %30 : vector<1x13x1xf32> to vector<13x1xf32>
    %32 = vector.shape_cast %29 : vector<13x1xf32> to vector<1x13x1xf32>
    tpu.vector_store %arg4[%c0_11, %c0_12, %c0_13], %32 {strides = array<i32>} : memref<1x13x1xf32, #tpu.memory_space<vmem>>, vector<1x13x1xf32>,
    %c0_14 = arith.constant 0 : index
    %c0_15 = arith.constant 0 : index
    %c0_16 = arith.constant 0 : index
    %33 = vector.load %arg5[%c0_14, %c0_15, %c0_16] : memref<1x13x1xf32, #tpu.memory_space<vmem>>, vector<1x13x1xf32>
    %34 = vector.shape_cast %33 : vector<1x13x1xf32> to vector<13x1xf32>
    %35 = arith.addf %24, %22 : vector<13x256xf32>
    %cst_17 = arith.constant dense<0.000000e+00> : vector<13xf32>
    %36 = vector.multi_reduction <add>, %35, %cst_17 [1] : vector<13x256xf32> to vector<13xf32>
    %37 = vector.shape_cast %36 : vector<13xf32> to vector<13x1xf32>
    %38 = arith.addf %34, %37 : vector<13x1xf32>
    %c0_18 = arith.constant 0 : index
    %c0_19 = arith.constant 0 : index
    %c0_20 = arith.constant 0 : index
    %39 = vector.load %arg5[%c0_18, %c0_19, %c0_20] : memref<1x13x1xf32, #tpu.memory_space<vmem>>, vector<1x13x1xf32>
    %40 = vector.shape_cast %39 : vector<1x13x1xf32> to vector<13x1xf32>
    %41 = vector.shape_cast %38 : vector<13x1xf32> to vector<1x13x1xf32>
    tpu.vector_store %arg5[%c0_18, %c0_19, %c0_20], %41 {strides = array<i32>} : memref<1x13x1xf32, #tpu.memory_space<vmem>>, vector<1x13x1xf32>,
    return
  }
  func.func @transform_0(%arg0: i32, %arg1: i32) -> (i32, i32, i32) {
    %c0_i32 = arith.constant 0 : i32
    %c0_i32_0 = arith.constant 0 : i32
    return %arg0, %c0_i32, %arg1 : i32, i32, i32
  }
  func.func @transform_1(%arg0: i32, %arg1: i32) -> (i32, i32, i32) {
    %c0_i32 = arith.constant 0 : i32
    %c0_i32_0 = arith.constant 0 : i32
    return %arg0, %c0_i32, %arg1 : i32, i32, i32
  }
  func.func @transform_2(%arg0: i32, %arg1: i32) -> (i32, i32, i32) {
    %c0_i32 = arith.constant 0 : i32
    %c0_i32_0 = arith.constant 0 : i32
    %c0_i32_1 = arith.constant 0 : i32
    return %arg0, %c0_i32, %c0_i32_0 : i32, i32, i32
  }
  func.func @transform_3(%arg0: i32, %arg1: i32) -> (i32, i32, i32) {
    %c0_i32 = arith.constant 0 : i32
    %c0_i32_0 = arith.constant 0 : i32
    %c0_i32_1 = arith.constant 0 : i32
    return %arg0, %c0_i32, %c0_i32_0 : i32, i32, i32
  }
}

</mosaic_0001>

<bundles_post_ra>
// kernel: dice_loss_pallas.1
= control target key start
LH: loop header
LB: loop body
LE: loop exit
PB: predicated region body
PF: predicated region fallthrough
CT: control target
= control target key end

     0   :  { %s596_s12 = smov 0   ;;  %s598_s13 = smov 0   ;;  %s676_s0 = inlined_call_operand.vmem [shape: f32[2,13,256], index: 0, kind: input, shape index: {}]   ;;  %s677_s1 = inlined_call_operand.vmem [shape: s32[2,1,256], index: 1, kind: input, shape index: {}]   ;;  %s678_s2 = inlined_call_operand.vmem [shape: f32[2,13,1], index: 2, kind: output, shape index: {0}]   ;;  %s679_s3 = inlined_call_operand.vmem [shape: f32[2,13,1], index: 3, kind: output, shape index: {1}]  }
   0x1   :  { %s600_s14 = smov 0  }
   0x2 LB: > { %s26_s15 = sadd.s32 1, %s569_s13  ;;  %p497_p0 = scmp.ge.s32.totalorder %s573_s14, 1  ;;  %s573_s14 = sphi %s600_s14, %s14_s14   ;;  %s569_s13 = sphi %s598_s13, %s681_s13   ;;  %s565_s12 = sphi %s596_s12, %s680_s12  }
   0x3   : > { %p28_p1 = scmp.ge.s32.totalorder %s26_s15, 2  ;;  %p175_p2 = scmp.lt.s32.totalorder %s573_s14, 3 }
   0x5   : > { %s683_s15 = smov (%p28_p1, %s26_s15), 0  ;;  %p176_p3 = pnand %p497_p0, %p175_p2 }
   0x6   : > { %p217_p4 = scmp.lt.s32.totalorder (!%p176_p3), %s565_s12, 1 }
   0x7   : > { %179 = sbr.rel (%p176_p3) target bundleno = 234 (0xea), region = 28 }
   0xc   : > { %s685_s12 = smov (!%p217_p4, %s565_s12), 1  ;;  %vm260_vm0 = vcmask 1044480   ;;  %vm249_vm1 = vcmask 7168   ;;  %v575_v7 = vmov 0.0   ;;  %v311_v44 = vlaneseq }
   0xd   : > { %s511_s16 = sshll.u32 %s685_s12, 5  ;;  %s512_s20 = sshll.u32 %s685_s12, 4  ;;  %vm251_vm6 = vcmask 4096  }
   0xe   : > { %s224_s19 = scalar_lea.vmem %s676_s0, %s511_s16  ;;  %s627_s23 = scalar_lea.vmem %s679_s3, %s512_s20  ;;  %v312_v49 = vshrl.u32 %v311_v44, 7 }
   0xf   : > { %v255_v0 = vld [vmem:[%s224_s19] sm:$0xff]  ;;  %v256_v1 = vld [vmem:[%s224_s19 + $0x8] sm:$0xff]  ;;  %v257_v2 = vld [vmem:[%s224_s19 + $0x10] sm:$0x1f]  ;;  %253 = vst.msk [vmem:[%s627_s23] sm:$0xff] %vm249_vm1, %v575_v7  ;;  %s500_s24 = sshll.u32 %s685_s12, 1  ;;  %s239_s30 = scalar_lea.vmem %s678_s2, %s512_s20 }
  0x10   : > { %v258_v3 = vld [vmem:[%s224_s19 + $0x18] sm:$0x1f]  ;;  %v261_v4 = vsel %vm260_vm0, %v257_v2, -inf  ;;  %s233_s27 = scalar_lea.vmem %s677_s1, %s500_s24  ;;  %v316_v51 = vsub.s32 0, %v312_v49  ;;  %v320_v53 = vsub.s32 1, %v312_v49  ;;  %v313_v55 = vadd.s32 8, %v312_v49 }
  0x11   : > { %v262_v5 = vmax.f32 %v255_v0, %v261_v4  ;;  %v269_v6 = vsel %vm260_vm0, %v258_v3, -inf  ;;  %v259_v52 = vld [vmem:[%s233_s27] sm:$0x3]  ;;  %250 = vst.msk [vmem:[%s239_s30] sm:$0xff] %vm249_vm1, %v575_v7 }
  0x12   : > { %v270_v8 = vmax.f32 %v256_v1, %v269_v6  ;;  %v317_v54 = vrot.slane %v259_v52, %v316_v51  ;;  %v321_v56 = vrot.slane %v259_v52, %v320_v53  ;;  %254 = vst.msk [vmem:[%s627_s23 + $0x8] sm:$0x1f] %vm251_vm6, %v575_v7  ;;  %252 = vst.msk [vmem:[%s239_s30 + $0x8] sm:$0x1f] %vm251_vm6, %v575_v7 }
  0x13   : > { %v263_v9 = vrot.slane %v262_v5, 4 }
  0x14   : > { %v271_v10 = vrot.slane %v270_v8, 4  ;;  %vm322_vm2 = vcmp.eq.s32.totalorder %v312_v49, %v317_v54  ;;  %vm324_vm3 = vcmp.eq.s32.totalorder %v313_v55, %v317_v54  ;;  %vm323_vm4 = vcmp.eq.s32.totalorder %v312_v49, %v321_v56 }
  0x15   : > { %v264_v11 = vmax.f32 %v262_v5, %v263_v9  ;;  %vm325_vm5 = vcmp.eq.s32.totalorder %v313_v55, %v321_v56  ;;  %v505_v58 = vsel %vm322_vm2, 1.0, %v575_v7  ;;  %v507_v59 = vsel %vm324_vm3, 1.0, %v575_v7 }
  0x16   : > { %v272_v12 = vmax.f32 %v270_v8, %v271_v10  ;;  %v506_v62 = vsel %vm323_vm4, 1.0, %v575_v7 }
  0x17   : > { %v265_v13 = vrot.slane %v264_v11, 2 }
  0x18   : > { %v273_v14 = vrot.slane %v272_v12, 2 }
  0x19   : > { %v266_v15 = vmax.f32 %v264_v11, %v265_v13 }
  0x1a   : > { %v274_v16 = vmax.f32 %v272_v12, %v273_v14 }
  0x1b   : > { %v267_v17 = vrot.slane %v266_v15, 1 }
  0x1c   : > { %v275_v18 = vrot.slane %v274_v16, 1 }
  0x1d   : > { %v268_v19 = vmax.f32 %v266_v15, %v267_v17 }
  0x1e   : > { %v276_v20 = vmax.f32 %v274_v16, %v275_v18 }
  0x1f   : > { %v277_v21 = vsub.f32 %v255_v0, %v268_v19  ;;  %v279_v22 = vsub.f32 %v257_v2, %v268_v19  ;;  %v508_v0 = vsel %vm325_vm5, 1.0, %v575_v7 }
  0x20   : > { %v278_v23 = vsub.f32 %v256_v1, %v276_v20  ;;  %v280_v24 = vsub.f32 %v258_v3, %v276_v20 }
  0x21   : > { %v281_v25 = vmul.f32 1.442695, %v277_v21  ;;  %v285_v26 = vmul.f32 1.442695, %v279_v22 }
  0x22   : > { %v283_v27 = vmul.f32 1.442695, %v278_v23  ;;  %v287_v28 = vmul.f32 1.442695, %v280_v24  ;;  %v342_v24 = vld [vmem:[%s239_s30] sm:$0xff] }
  0x23   : > { %539 = vpow2.f32 %v281_v25  ;;  %v358_v25 = vld [vmem:[%s627_s23] sm:$0xff] }
  0x24   : > { %541 = vpow2.f32 %v283_v27 }
  0x25   : > { %543 = vpow2.f32 %v285_v26 }
  0x26   : > { %545 = vpow2.f32 %v287_v28 }
  0x30   : > { %v540_v29 = vpop.eup %539 }
  0x31   : > { %v542_v30 = vpop.eup %541 }
  0x32   : > { %v544_v31 = vpop.eup %543 }
  0x33   : > { %v546_v32 = vpop.eup %545  ;;  %v289_v33 = vsel %vm260_vm0, %v544_v31, 0.0 }
  0x34   : > { %v290_v34 = vadd.f32 %v540_v29, %v289_v33  ;;  %v297_v35 = vsel %vm260_vm0, %v546_v32, 0.0 }
  0x35   : > { %v298_v36 = vadd.f32 %v542_v30, %v297_v35 }
  0x36   : > { %v291_v37 = vrot.slane %v290_v34, 4 }
  0x37   : > { %v299_v38 = vrot.slane %v298_v36, 4 }
  0x38   : > { %v292_v39 = vadd.f32 %v291_v37, %v290_v34 }
  0x39   : > { %v300_v40 = vadd.f32 %v299_v38, %v298_v36 }
  0x3a   : > { %v293_v41 = vrot.slane %v292_v39, 2 }
  0x3b   : > { %v301_v42 = vrot.slane %v300_v40, 2 }
  0x3c   : > { %v294_v43 = vadd.f32 %v293_v41, %v292_v39 }
  0x3d   : > { %v302_v45 = vadd.f32 %v301_v42, %v300_v40 }
  0x3e   : > { %v295_v46 = vrot.slane %v294_v43, 1 }
  0x3f   : > { %v303_v47 = vrot.slane %v302_v45, 1 }
  0x40   : > { %v296_v48 = vadd.f32 %v295_v46, %v294_v43 }
  0x41   : > { %v304_v50 = vadd.f32 %v303_v47, %v302_v45 }
  0x42   : > { %547 = vrcp.f32 %v296_v48 }
  0x43   : > { %549 = vrcp.f32 %v304_v50 }
  0x4f   : > { %v548_v57 = vpop.eup %547 }
  0x50   : > { %v550_v60 = vpop.eup %549  ;;  %v307_v61 = vmul.f32 %v548_v57, %v540_v29  ;;  %v309_v63 = vmul.f32 %v548_v57, %v544_v31  ;;  %v343_v29 = vld [vmem:[%s239_s30 + $0x8] sm:$0x1f] }
  0x51   : > { %v308_v1 = vmul.f32 %v550_v60, %v542_v30  ;;  %v310_v2 = vmul.f32 %v550_v60, %v546_v32  ;;  %v359_v31 = vld [vmem:[%s627_s23 + $0x8] sm:$0x1f] }
  0x52   : > { %v338_v3 = vmul.f32 %v307_v61, %v307_v61  ;;  %v334_v4 = vmul.f32 %v505_v58, %v307_v61  ;;  %v340_v5 = vmul.f32 %v309_v63, %v309_v63  ;;  %v336_v6 = vmul.f32 %v507_v59, %v309_v63 }
  0x53   : > { %v339_v8 = vmul.f32 %v308_v1, %v308_v1  ;;  %v335_v9 = vmul.f32 %v506_v62, %v308_v1  ;;  %v341_v10 = vmul.f32 %v310_v2, %v310_v2  ;;  %v337_v11 = vmul.f32 %v508_v0, %v310_v2 }
  0x54   : > { %v360_v12 = vadd.f32 %v505_v58, %v338_v3  ;;  %v362_v13 = vadd.f32 %v507_v59, %v340_v5  ;;  %v347_v14 = vsel %vm260_vm0, %v336_v6, 0.0 }
  0x55   : > { %v361_v15 = vadd.f32 %v506_v62, %v339_v8  ;;  %v344_v16 = vadd.f32 %v335_v9, %v334_v4  ;;  %v363_v17 = vadd.f32 %v508_v0, %v341_v10  ;;  %v348_v18 = vsel %vm260_vm0, %v337_v11, 0.0 }
  0x56   : > { %v367_v19 = vsel %vm260_vm0, %v362_v13, 0.0  ;;  %v349_v22 = vadd.f32 %v348_v18, %v347_v14 }
  0x57   : > { %v364_v20 = vadd.f32 %v361_v15, %v360_v12  ;;  %345 = vadd.xlane.f32.xlu0 %v344_v16  ;;  %v368_v21 = vsel %vm260_vm0, %v363_v17, 0.0 }
  0x58   : > { %v369_v23 = vadd.f32 %v368_v21, %v367_v19 }
  0x59   : > { %365 = vadd.xlane.f32.xlu1 %v364_v20 }
  0x5b   : > { %350 = vadd.xlane.f32.xlu0 %v349_v22 }
  0x5d   : > { %370 = vadd.xlane.f32.xlu1 %v369_v23 }
  0xe0   : > { %v346_v26 = vpop.xlane.xlu0 %345 }
  0xe1   : > { %v352_v27 = vadd.f32 %v346_v26, %v342_v24 }
  0xe2   : > { %v366_v28 = vpop.xlane.xlu1 %365 }
  0xe3   : > { %v372_v30 = vadd.f32 %v366_v28, %v358_v25  ;;  %355 = vst.msk [vmem:[%s239_s30] sm:$0xff] %vm249_vm1, %v352_v27 }
  0xe4   : > { %v351_v32 = vpop.xlane.xlu0 %350 }
  0xe5   : > { %374 = vst.msk [vmem:[%s627_s23] sm:$0xff] %vm249_vm1, %v372_v30  ;;  %v353_v33 = vadd.f32 %v351_v32, %v343_v29 }
  0xe6   : > { %v371_v34 = vpop.xlane.xlu1 %370 }
  0xe7   : > { %v373_v35 = vadd.f32 %v371_v34, %v359_v31  ;;  %357 = vst.msk [vmem:[%s239_s30 + $0x8] sm:$0x1f] %vm251_vm6, %v353_v33 }
  0xe9   : > { %375 = vst.msk [vmem:[%s627_s23 + $0x8] sm:$0x1f] %vm251_vm6, %v373_v35 }
  0xea PF: > { %s14_s14 = sadd.s32 1, %s573_s14   ;;  %s680_s12 = smov %s569_s13 }
  0xeb   : > { %p11_p5 = scmp.ge.s32.totalorder %s14_s14, 4   ;;  %s681_s13 = smov %s683_s15 }
  0xed   :  { %13 = sbr.rel (!%p11_p5) target bundleno = 2 (0x2), region = 77 }

</bundles_post_ra>
